<compile_context>
chip_gen: v7x
topology: tpu7x:2x2x1
jax: 0.10.0
libtpu: 0.0.40
codegen_flags: <defaults>
</compile_context>

<pallas_src>
import functools

import jax
import jax.numpy as jnp
from jax.experimental import pallas as pl
from jax.experimental.pallas import tpu as pltpu


def _round_up(x, m):
    return ((x + m - 1) // m) * m


# ----------------------------------------------------------------------------
# Activation library (mirrors the PyTorch `Activations` dict).
# Applied at trace time inside the kernel, on the f32 accumulator.
# ----------------------------------------------------------------------------
def _apply_activation(y, activation):
    if activation is None:
        return y
    if activation == "relu":
        return jnp.maximum(y, 0.0)
    if activation == "tanh":
        return jnp.tanh(y)
    if activation == "sigmoid":
        return jax.nn.sigmoid(y)
    if activation == "gelu":
        # PyTorch nn.GELU default is the exact erf formulation.
        return jax.nn.gelu(y, approximate=False)
    if activation == "elu":
        return jnp.where(y > 0.0, y, jnp.expm1(y))
    if activation == "sine":
        return jnp.sin(y)
    if activation == "rational":
        # Rational module: P(x)/Q(x), best degree-(3,2) approx of ReLU.
        # Coeffs from reset_parameters(); coeffs[0,1] is zeroed in forward().
        #   P(x) = 1.1915 x^3 + 1.5957 x^2 + 0.5 x + 0.0218
        #   Q(x) = 2.383  x^2 + 1.0
        p = ((1.1915 * y + 1.5957) * y + 0.5) * y + 0.0218
        q = 2.383 * y * y + 1.0
        # Divide via EUP approx reciprocal + one Newton-Raphson refinement:
        # rel error ~ (approx err)^2 << 1e-5, and the divide leaves the VALU.
        r = pl.reciprocal(q, approx=True)
        r = r * (2.0 - q * r)
        return p * r
    raise ValueError(f"unknown activation: {activation!r}")


# ----------------------------------------------------------------------------
# Fully fused MLP kernel:  o = L_n(act(L_{n-1}(... act(L_0(x)) ...)))
# Kernel args: x tile, then n_layers weight refs, n_layers bias refs, out tile.
# ----------------------------------------------------------------------------
def _fused_mlp_kernel(x_ref, *refs, n_layers, activation, compute_dtype):
    w_refs = refs[:n_layers]
    b_refs = refs[n_layers : 2 * n_layers]
    o_ref = refs[2 * n_layers]

    h = x_ref[...].astype(jnp.float32)
    for j in range(n_layers):
        w = w_refs[j][...]
        b = b_refs[j][...].astype(jnp.float32)
        y = (
            jnp.dot(
                h.astype(compute_dtype),
                w.astype(compute_dtype),
                preferred_element_type=jnp.float32,
            )
            + b
        )
        h = _apply_activation(y, activation) if j != n_layers - 1 else y
    o_ref[...] = h.astype(o_ref.dtype)


def shallow_nn_forward(
    x, weights, biases, nonlinearity="relu", *, tm_cap=512, compute_dtype=None
):
    """ShallowNN.forward as a single fused Pallas kernel.

    weights[j]: (layers[j], layers[j+1]);  biases[j]: (layers[j+1],)
    compute_dtype: set jnp.bfloat16 to hit the bf16-native MXU peak on
    v5e/v6e/v7x when the accuracy budget allows (f32 accumulation is kept).
    """
    n_layers = len(weights)
    assert n_layers >= 1 and len(biases) == n_layers
    M, K0 = x.shape
    dims = [K0] + [w.shape[1] for w in weights]
    for j in range(n_layers):
        assert weights[j].shape == (dims[j], dims[j + 1])
        assert biases[j].shape == (dims[j + 1],)

    if compute_dtype is None:
        compute_dtype = x.dtype

    # Lane-dense padding of every feature dim.
    dpad = [_round_up(d, 128) for d in dims]

    # Grid only over the batch.  tm is always a multiple of 8 and <= tm_cap.
    tm = min(tm_cap, _round_up(M, 8))
    m_pad = _round_up(M, tm)
    grid = (m_pad // tm,)

    x_p = jnp.zeros((m_pad, dpad[0]), x.dtype).at[: M, : dims[0]].set(x)
    w_p = [
        jnp.zeros((dpad[j], dpad[j + 1]), weights[j].dtype)
        .at[: dims[j], : dims[j + 1]]
        .set(weights[j])
        for j in range(n_layers)
    ]
    b_p = [
        jnp.zeros((1, dpad[j + 1]), biases[j].dtype)
        .at[0, : dims[j + 1]]
        .set(biases[j])
        for j in range(n_layers)
    ]

    kernel = functools.partial(
        _fused_mlp_kernel,
        n_layers=n_layers,
        activation=nonlinearity,
        compute_dtype=compute_dtype,
    )

    # x tile streams over the batch; weights/biases use a constant index_map so
    # the pipeline fetches them once and keeps them resident in VMEM.
    in_specs = [pl.BlockSpec((tm, dpad[0]), lambda i: (i, 0))]
    for j in range(n_layers):
        in_specs.append(pl.BlockSpec((dpad[j], dpad[j + 1]), lambda i: (0, 0)))
    for j in range(n_layers):
        in_specs.append(pl.BlockSpec((1, dpad[j + 1]), lambda i: (0, 0)))

    out = pl.pallas_call(
        kernel,
        out_shape=jax.ShapeDtypeStruct((m_pad, dpad[-1]), x.dtype),
        grid_spec=pltpu.PrefetchScalarGridSpec(
            num_scalar_prefetch=0,
            grid=grid,
            in_specs=in_specs,
            out_specs=pl.BlockSpec((tm, dpad[-1]), lambda i: (i, 0)),
        ),
        compiler_params=pltpu.CompilerParams(
            dimension_semantics=("parallel",),
            vmem_limit_bytes=32 * 1024 * 1024,  # safe on v5e/v6e and v7x
        ),
    )(x_p, *w_p, *b_p)

    return out[:M, : dims[-1]]


if __name__ == "__main__":
    key = jax.random.PRNGKey(0)

    # Small shapes consistent with the module: layers=[32, 64, 64, 16], batch=8.
    layers = [32, 64, 64, 16]
    batch = 8
    nonlinearity = "rational"

    n_layers = len(layers) - 1
    keys = jax.random.split(key, 1 + 2 * n_layers)
    x = jax.random.normal(keys[0], (batch, layers[0]), dtype=jnp.float32)

    weights, biases = [], []
    for j in range(n_layers):
        fan_in = layers[j]
        bound = 1.0 / (fan_in ** 0.5)
        w = jax.random.uniform(
            keys[1 + 2 * j],
            (layers[j], layers[j + 1]),
            minval=-bound,
            maxval=bound,
            dtype=jnp.float32,
        )
        bvec = jax.random.uniform(
            keys[2 + 2 * j],
            (layers[j + 1],),
            minval=-bound,
            maxval=bound,
            dtype=jnp.float32,
        )
        weights.append(w)
        biases.append(bvec)

    y = shallow_nn_forward(x, weights, biases, nonlinearity=nonlinearity)
    y = jax.block_until_ready(y)

    # Pure-JAX reference of the same forward pass.
    ref = x
    for j in range(n_layers):
        ref = ref @ weights[j] + biases[j]
        if j != n_layers - 1:
            r = ref
            p = ((1.1915 * r + 1.5957) * r + 0.5) * r + 0.0218
            q = 2.383 * r * r + 1.0
            ref = p / q

    assert y.shape == (batch, layers[-1]) and y.dtype == x.dtype
    assert jnp.allclose(y, ref, atol=1e-5, rtol=1e-5)

    print("KERNEL_OK")
</pallas_src>

<mosaic_0001>
module attributes {stable_mosaic.version = 11 : i64} {
  func.func @_fused_mlp_kernel(%arg0: i32, %arg1: memref<8x128xf32, #tpu.memory_space<vmem>>, %arg2: memref<128x128xf32, #tpu.memory_space<vmem>>, %arg3: memref<128x128xf32, #tpu.memory_space<vmem>>, %arg4: memref<128x128xf32, #tpu.memory_space<vmem>>, %arg5: memref<1x128xf32, #tpu.memory_space<vmem>>, %arg6: memref<1x128xf32, #tpu.memory_space<vmem>>, %arg7: memref<1x128xf32, #tpu.memory_space<vmem>>, %arg8: memref<8x128xf32, #tpu.memory_space<vmem>>) attributes {dimension_semantics = [#tpu.dimension_semantics<parallel>], iteration_bounds = array<i64: 1>, scalar_prefetch = 0 : i64, scratch_operands = 0 : i64, tpu.core_type = #tpu.core_type<tc>, window_params = [{transform_indices = @transform_0, window_bounds = array<i64: 8, 128>}, {pipeline_mode = #tpu.pipeline_mode<synchronous>, transform_indices = @transform_1, window_bounds = array<i64: 128, 128>}, {pipeline_mode = #tpu.pipeline_mode<synchronous>, transform_indices = @transform_2, window_bounds = array<i64: 128, 128>}, {pipeline_mode = #tpu.pipeline_mode<synchronous>, transform_indices = @transform_3, window_bounds = array<i64: 128, 128>}, {pipeline_mode = #tpu.pipeline_mode<synchronous>, transform_indices = @transform_4, window_bounds = array<i64: 1, 128>}, {pipeline_mode = #tpu.pipeline_mode<synchronous>, transform_indices = @transform_5, window_bounds = array<i64: 1, 128>}, {pipeline_mode = #tpu.pipeline_mode<synchronous>, transform_indices = @transform_6, window_bounds = array<i64: 1, 128>}, {transform_indices = @transform_7, window_bounds = array<i64: 8, 128>}]} {
    %c0 = arith.constant 0 : index
    %c0_0 = arith.constant 0 : index
    %0 = vector.load %arg1[%c0, %c0_0] : memref<8x128xf32, #tpu.memory_space<vmem>>, vector<8x128xf32>
    %c0_1 = arith.constant 0 : index
    %c0_2 = arith.constant 0 : index
    %1 = vector.load %arg2[%c0_1, %c0_2] : memref<128x128xf32, #tpu.memory_space<vmem>>, vector<128x128xf32>
    %c0_3 = arith.constant 0 : index
    %c0_4 = arith.constant 0 : index
    %2 = vector.load %arg5[%c0_3, %c0_4] : memref<1x128xf32, #tpu.memory_space<vmem>>, vector<1x128xf32>
    %cst = arith.constant dense<0.000000e+00> : vector<8x128xf32>
    %3 = tpu.matmul %0, %1, %cst {dimension_numbers = #tpu.dot_dimension_numbers<[1], [0], [0], [1], [0, 0, 1, 1], [], []>} : vector<8x128xf32>, vector<128x128xf32>, vector<8x128xf32> -> vector<8x128xf32>
    %4 = vector.broadcast %2 : vector<1x128xf32> to vector<8x128xf32>
    %5 = arith.addf %3, %4 : vector<8x128xf32>
    %cst_5 = arith.constant 1.191500e+00 : f32
    %6 = vector.broadcast %cst_5 : f32 to vector<8x128xf32>
    %7 = arith.mulf %6, %5 : vector<8x128xf32>
    %cst_6 = arith.constant 1.595700e+00 : f32
    %8 = vector.broadcast %cst_6 : f32 to vector<8x128xf32>
    %9 = arith.addf %7, %8 : vector<8x128xf32>
    %10 = arith.mulf %9, %5 : vector<8x128xf32>
    %cst_7 = arith.constant 5.000000e-01 : f32
    %11 = vector.broadcast %cst_7 : f32 to vector<8x128xf32>
    %12 = arith.addf %10, %11 : vector<8x128xf32>
    %13 = arith.mulf %12, %5 : vector<8x128xf32>
    %cst_8 = arith.constant 2.180000e-02 : f32
    %14 = vector.broadcast %cst_8 : f32 to vector<8x128xf32>
    %15 = arith.addf %13, %14 : vector<8x128xf32>
    %cst_9 = arith.constant 2.383000e+00 : f32
    %16 = vector.broadcast %cst_9 : f32 to vector<8x128xf32>
    %17 = arith.mulf %16, %5 : vector<8x128xf32>
    %18 = arith.mulf %17, %5 : vector<8x128xf32>
    %cst_10 = arith.constant 1.000000e+00 : f32
    %19 = vector.broadcast %cst_10 : f32 to vector<8x128xf32>
    %20 = arith.addf %18, %19 : vector<8x128xf32>
    %21 = tpu.reciprocal %20 {approx = true} : vector<8x128xf32> -> vector<8x128xf32>
    %22 = arith.mulf %20, %21 : vector<8x128xf32>
    %cst_11 = arith.constant 2.000000e+00 : f32
    %23 = vector.broadcast %cst_11 : f32 to vector<8x128xf32>
    %24 = arith.subf %23, %22 : vector<8x128xf32>
    %25 = arith.mulf %21, %24 : vector<8x128xf32>
    %26 = arith.mulf %15, %25 : vector<8x128xf32>
    %c0_12 = arith.constant 0 : index
    %c0_13 = arith.constant 0 : index
    %27 = vector.load %arg3[%c0_12, %c0_13] : memref<128x128xf32, #tpu.memory_space<vmem>>, vector<128x128xf32>
    %c0_14 = arith.constant 0 : index
    %c0_15 = arith.constant 0 : index
    %28 = vector.load %arg6[%c0_14, %c0_15] : memref<1x128xf32, #tpu.memory_space<vmem>>, vector<1x128xf32>
    %cst_16 = arith.constant dense<0.000000e+00> : vector<8x128xf32>
    %29 = tpu.matmul %26, %27, %cst_16 {dimension_numbers = #tpu.dot_dimension_numbers<[1], [0], [0], [1], [0, 0, 1, 1], [], []>} : vector<8x128xf32>, vector<128x128xf32>, vector<8x128xf32> -> vector<8x128xf32>
    %30 = vector.broadcast %28 : vector<1x128xf32> to vector<8x128xf32>
    %31 = arith.addf %29, %30 : vector<8x128xf32>
    %cst_17 = arith.constant 1.191500e+00 : f32
    %32 = vector.broadcast %cst_17 : f32 to vector<8x128xf32>
    %33 = arith.mulf %32, %31 : vector<8x128xf32>
    %cst_18 = arith.constant 1.595700e+00 : f32
    %34 = vector.broadcast %cst_18 : f32 to vector<8x128xf32>
    %35 = arith.addf %33, %34 : vector<8x128xf32>
    %36 = arith.mulf %35, %31 : vector<8x128xf32>
    %cst_19 = arith.constant 5.000000e-01 : f32
    %37 = vector.broadcast %cst_19 : f32 to vector<8x128xf32>
    %38 = arith.addf %36, %37 : vector<8x128xf32>
    %39 = arith.mulf %38, %31 : vector<8x128xf32>
    %cst_20 = arith.constant 2.180000e-02 : f32
    %40 = vector.broadcast %cst_20 : f32 to vector<8x128xf32>
    %41 = arith.addf %39, %40 : vector<8x128xf32>
    %cst_21 = arith.constant 2.383000e+00 : f32
    %42 = vector.broadcast %cst_21 : f32 to vector<8x128xf32>
    %43 = arith.mulf %42, %31 : vector<8x128xf32>
    %44 = arith.mulf %43, %31 : vector<8x128xf32>
    %cst_22 = arith.constant 1.000000e+00 : f32
    %45 = vector.broadcast %cst_22 : f32 to vector<8x128xf32>
    %46 = arith.addf %44, %45 : vector<8x128xf32>
    %47 = tpu.reciprocal %46 {approx = true} : vector<8x128xf32> -> vector<8x128xf32>
    %48 = arith.mulf %46, %47 : vector<8x128xf32>
    %cst_23 = arith.constant 2.000000e+00 : f32
    %49 = vector.broadcast %cst_23 : f32 to vector<8x128xf32>
    %50 = arith.subf %49, %48 : vector<8x128xf32>
    %51 = arith.mulf %47, %50 : vector<8x128xf32>
    %52 = arith.mulf %41, %51 : vector<8x128xf32>
    %c0_24 = arith.constant 0 : index
    %c0_25 = arith.constant 0 : index
    %53 = vector.load %arg4[%c0_24, %c0_25] : memref<128x128xf32, #tpu.memory_space<vmem>>, vector<128x128xf32>
    %c0_26 = arith.constant 0 : index
    %c0_27 = arith.constant 0 : index
    %54 = vector.load %arg7[%c0_26, %c0_27] : memref<1x128xf32, #tpu.memory_space<vmem>>, vector<1x128xf32>
    %cst_28 = arith.constant dense<0.000000e+00> : vector<8x128xf32>
    %55 = tpu.matmul %52, %53, %cst_28 {dimension_numbers = #tpu.dot_dimension_numbers<[1], [0], [0], [1], [0, 0, 1, 1], [], []>} : vector<8x128xf32>, vector<128x128xf32>, vector<8x128xf32> -> vector<8x128xf32>
    %56 = vector.broadcast %54 : vector<1x128xf32> to vector<8x128xf32>
    %57 = arith.addf %55, %56 : vector<8x128xf32>
    %c0_29 = arith.constant 0 : index
    %c0_30 = arith.constant 0 : index
    %58 = vector.load %arg8[%c0_29, %c0_30] : memref<8x128xf32, #tpu.memory_space<vmem>>, vector<8x128xf32>
    tpu.vector_store %arg8[%c0_29, %c0_30], %57 {strides = array<i32>} : memref<8x128xf32, #tpu.memory_space<vmem>>, vector<8x128xf32>,
    return
  }
  func.func @transform_0(%arg0: i32) -> (i32, i32) {
    %c0_i32 = arith.constant 0 : i32
    %c0_i32_0 = arith.constant 0 : i32
    return %arg0, %c0_i32 : i32, i32
  }
  func.func @transform_1(%arg0: i32) -> (i32, i32) {
    %c0_i32 = arith.constant 0 : i32
    %c0_i32_0 = arith.constant 0 : i32
    %c0_i32_1 = arith.constant 0 : i32
    return %c0_i32, %c0_i32_0 : i32, i32
  }
  func.func @transform_2(%arg0: i32) -> (i32, i32) {
    %c0_i32 = arith.constant 0 : i32
    %c0_i32_0 = arith.constant 0 : i32
    %c0_i32_1 = arith.constant 0 : i32
    return %c0_i32, %c0_i32_0 : i32, i32
  }
  func.func @transform_3(%arg0: i32) -> (i32, i32) {
    %c0_i32 = arith.constant 0 : i32
    %c0_i32_0 = arith.constant 0 : i32
    %c0_i32_1 = arith.constant 0 : i32
    return %c0_i32, %c0_i32_0 : i32, i32
  }
  func.func @transform_4(%arg0: i32) -> (i32, i32) {
    %c0_i32 = arith.constant 0 : i32
    %c0_i32_0 = arith.constant 0 : i32
    %c0_i32_1 = arith.constant 0 : i32
    return %c0_i32, %c0_i32_0 : i32, i32
  }
  func.func @transform_5(%arg0: i32) -> (i32, i32) {
    %c0_i32 = arith.constant 0 : i32
    %c0_i32_0 = arith.constant 0 : i32
    %c0_i32_1 = arith.constant 0 : i32
    return %c0_i32, %c0_i32_0 : i32, i32
  }
  func.func @transform_6(%arg0: i32) -> (i32, i32) {
    %c0_i32 = arith.constant 0 : i32
    %c0_i32_0 = arith.constant 0 : i32
    %c0_i32_1 = arith.constant 0 : i32
    return %c0_i32, %c0_i32_0 : i32, i32
  }
  func.func @transform_7(%arg0: i32) -> (i32, i32) {
    %c0_i32 = arith.constant 0 : i32
    %c0_i32_0 = arith.constant 0 : i32
    return %arg0, %c0_i32 : i32, i32
  }
}

</mosaic_0001>

<bundles_post_ra>
// kernel: tpu_custom_call.1
= control target key start
LH: loop header
LB: loop body
LE: loop exit
PB: predicated region body
PF: predicated region fallthrough
CT: control target
= control target key end

     0   :  { %12 = vsyncpa [#allocation3], 0  ;;  %s924_s0 = inlined_call_operand.hbm [shape: f32[8,128], index: 0, kind: input, shape index: {}]   ;;  %s925_s1 = inlined_call_operand.hbm [shape: f32[128,128], index: 1, kind: input, shape index: {}]   ;;  %s926_s2 = inlined_call_operand.hbm [shape: f32[128,128], index: 2, kind: input, shape index: {}]   ;;  %s927_s3 = inlined_call_operand.hbm [shape: f32[128,128], index: 3, kind: input, shape index: {}]   ;;  %s928_s4 = inlined_call_operand.vmem [shape: f32[1,128], index: 4, kind: input, shape index: {}]   ;;  %s929_s5 = inlined_call_operand.vmem [shape: f32[1,128], index: 5, kind: input, shape index: {}]   ;;  %s930_s6 = inlined_call_operand.vmem [shape: f32[1,128], index: 6, kind: input, shape index: {}]   ;;  %s931_s7 = inlined_call_operand.hbm [shape: f32[8,128], index: 7, kind: output, shape index: {}]  }
   0x1   :  { %13 = vsyncpa [#allocation6], 0 }
   0x2   :  { %14 = vsyncpa [#allocation9], 0 }
   0x3   :  { %15 = vsyncpa [#allocation4], 0  ;;  %s769_s24 = smov [#allocation5]   ;;  %s651_s28 = scalar_lea.hbm %s925_s1, 2048 }
   0x4   :  { %s31_s25 = sshll.u32 %s769_s24, 4  ;;  %p652_p0 = scmp.ne.s32.totalorder %s925_s1, %s651_s28  ;;  %s32_s25 = int_to_ptr.vmem [resolvable:$true] %s31_s25 }
   0x5   :  { %p655_p1 = scmp.lt.u32.totalorder %s651_s28, %s925_s1 }
   0x7   :  { %p657_p2 = pnand %p655_p1, %p652_p0 }
   0x9   :  { %660 = shalt.err (!%p657_p2)
}
   0xa   :  { %s661_s10 = scalar_lea.vmem %s32_s25, 2048  ;;  %p666_p4 = scmp.lt.s32.totalorder %s32_s25, %s32_s25 }
   0xb   :  { %p662_p3 = scmp.ne.s32.totalorder %s32_s25, %s661_s10  ;;  %p667_p5 = scmp.lt.s32.totalorder %s661_s10, %s661_s10 }
   0xd   :  { %p668_p6 = por %p667_p5, %p666_p4 }
   0xf   :  { %p669_p7 = pnand %p668_p6, %p662_p3 }
  0x11   :  { %672 = shalt.err (!%p669_p7)
}
  0x12   :  { %s770_s11 = smov 128   ;;  %s771_s12 = smov 8  }
  0x13   :  { %37 = dma.hbm_to_vmem [thread:$0]  %s925_s1, 2048, %s32_s25, [#allocation6], %s770_s11, %s770_s11, %s771_s12  }
  0x14   :  { %s772_s15 = smov [#allocation2]   ;;  %s773_s17 = smov [#allocation7]  }
  0x15   :  { %s22_s16 = sshll.u32 %s772_s15, 4  ;;  %s43_s18 = sshll.u32 %s773_s17, 4  ;;  %s23_s16 = int_to_ptr.vmem [resolvable:$true] %s22_s16  ;;  %s44_s18 = int_to_ptr.vmem [resolvable:$true] %s43_s18 }
  0x16   :  { %s673_s21 = scalar_lea.hbm %s924_s0, 128 }
  0x17   :  { %p674_p8 = scmp.ne.s32.totalorder %s924_s0, %s673_s21  ;;  %p677_p9 = scmp.lt.u32.totalorder %s673_s21, %s924_s0 }
  0x19   :  { %p679_p10 = pnand %p677_p9, %p674_p8 }
  0x1b   :  { %682 = shalt.err (!%p679_p10)
}
  0x1c   :  { %s683_s1 = scalar_lea.vmem %s23_s16, 128  ;;  %p688_p12 = scmp.lt.s32.totalorder %s23_s16, %s23_s16 }
  0x1d   :  { %p684_p11 = scmp.ne.s32.totalorder %s23_s16, %s683_s1  ;;  %p689_p13 = scmp.lt.s32.totalorder %s683_s1, %s683_s1 }
  0x1f   :  { %p690_p0 = por %p689_p13, %p688_p12 }
  0x21   :  { %p691_p1 = pnand %p690_p0, %p684_p11 }
  0x23   :  { %694 = shalt.err (!%p691_p1)
}
  0x24   :  { %25 = dma.hbm_to_vmem [thread:$0]  %s924_s0, 128, %s23_s16, [#allocation3]  }
  0x25   :  { %s695_s30 = scalar_lea.hbm %s926_s2, 2048 }
  0x26   :  { %p696_p2 = scmp.ne.s32.totalorder %s926_s2, %s695_s30  ;;  %p699_p3 = scmp.lt.u32.totalorder %s695_s30, %s926_s2 }
  0x28   :  { %p701_p4 = pnand %p699_p3, %p696_p2 }
  0x2a   :  { %704 = shalt.err (!%p701_p4)
}
  0x2b   :  { %s705_s14 = scalar_lea.vmem %s44_s18, 2048  ;;  %p710_p6 = scmp.lt.s32.totalorder %s44_s18, %s44_s18 }
  0x2c   :  { %p706_p5 = scmp.ne.s32.totalorder %s44_s18, %s705_s14  ;;  %p711_p7 = scmp.lt.s32.totalorder %s705_s14, %s705_s14 }
  0x2e   :  { %p712_p8 = por %p711_p7, %p710_p6 }
  0x30   :  { %p713_p9 = pnand %p712_p8, %p706_p5 }
  0x32   :  { %716 = shalt.err (!%p713_p9)
}
  0x33   :  { %49 = dma.hbm_to_vmem [thread:$0]  %s926_s2, 2048, %s44_s18, [#allocation6], %s770_s11, %s770_s11, %s771_s12  }
  0x34   :  { %s774_s16 = smov [#allocation8]   ;;  %s717_s21 = scalar_lea.hbm %s927_s3, 2048 }
  0x35   :  { %s55_s17 = sshll.u32 %s774_s16, 4  ;;  %p718_p10 = scmp.ne.s32.totalorder %s927_s3, %s717_s21  ;;  %s56_s17 = int_to_ptr.vmem [resolvable:$true] %s55_s17 }
  0x36   :  { %p721_p11 = scmp.lt.u32.totalorder %s717_s21, %s927_s3 }
  0x38   :  { %p723_p12 = pnand %p721_p11, %p718_p10 }
  0x3a   :  { %726 = shalt.err (!%p723_p12)
}
  0x3b   :  { %s727_s1 = scalar_lea.vmem %s56_s17, 2048  ;;  %p732_p0 = scmp.lt.s32.totalorder %s56_s17, %s56_s17 }
  0x3c   :  { %p728_p13 = scmp.ne.s32.totalorder %s56_s17, %s727_s1  ;;  %p733_p1 = scmp.lt.s32.totalorder %s727_s1, %s727_s1 }
  0x3e   :  { %p734_p2 = por %p733_p1, %p732_p0 }
  0x40   :  { %p735_p3 = pnand %p734_p2, %p728_p13 }
  0x42   :  { %738 = shalt.err (!%p735_p3)
}
  0x43   :  { %61 = dma.hbm_to_vmem [thread:$0]  %s927_s3, 2048, %s56_s17, [#allocation9], %s770_s11, %s770_s11, %s771_s12  }
  0x44   :  { %761 = dma.done.wait [#allocation3], 128  }
  0x45   :  { %762 = vsyncadd [#allocation3], 4294967168 }
  0x46   :  { %763 = dma.done.wait [#allocation6], 4096  }
  0x47   :  { %764 = vsyncadd [#allocation6], 4294963200 }
  0x48   :  { %765 = dma.done.wait [#allocation9], 2048  }
  0x49   :  { %766 = vsyncadd [#allocation9], 4294965248  ;;  %v775_v0 = vmov 0.0|0.0   ;;  %vm776_vm0 = vmmov 0   ;;  %v777_v1 = vmov 0.0   ;;  %v81_v2 = vld [vmem:[#allocation5] sm:$0xff] }
  0x4a   :  { %565 = vmatprep.subr.bf16.mxu0 %v775_v0  ;;  %492 = vmatprep.mubr.msk.f32.mxu0 %vm776_vm0, %v777_v1  ;;  %v82_v3 = vld [vmem:[#allocation5 + $0x8] sm:$0xff]  ;;  %v83_v4 = vld [vmem:[#allocation5 + $0x10] sm:$0xff]  ;;  %v84_v6 = vld [vmem:[#allocation5 + $0x18] sm:$0xff]  ;;  %s778_s27 = smov [#allocation10]  }
  0x4b   :  { %589 = vmatprep.subr.bf16.mxu1 %v775_v0  ;;  %527 = vmatprep.mubr.msk.f32.mxu1 %vm776_vm0, %v777_v1  ;;  %v566_v5 = vpack.c.bf16 %v82_v3, %v81_v2  ;;  %v569_v7 = vpack.c.bf16 %v84_v6, %v83_v4  ;;  %v85_v8 = vld [vmem:[#allocation5 + $0x20] sm:$0xff]  ;;  %v86_v9 = vld [vmem:[#allocation5 + $0x28] sm:$0xff]  ;;  %v87_v14 = vld [vmem:[#allocation5 + $0x30] sm:$0xff]  ;;  %s395_s28 = sshll.u32 %s778_s27, 4  ;;  %s396_s28 = int_to_ptr.vmem [resolvable:$true] %s395_s28 }
  0x4c   :  { %v188_v10 = vld [vmem:[#allocation7] sm:$0xff]  ;;  %v189_v11 = vld [vmem:[#allocation7 + $0x8] sm:$0xff]  ;;  %v572_v12 = vpack.c.bf16 %v86_v9, %v85_v8  ;;  %v88_v15 = vld [vmem:[#allocation5 + $0x38] sm:$0xff]  ;;  %s739_s29 = scalar_lea.vmem %s396_s28, 128  ;;  %p744_p5 = scmp.lt.s32.totalorder %s396_s28, %s396_s28 }
  0x4d   :  { %567 = vmatpush3.bf16.msra.mxu0 %v566_v5  ;;  %v590_v13 = vpack.c.bf16 %v189_v11, %v188_v10  ;;  %v575_v16 = vpack.c.bf16 %v88_v15, %v87_v14  ;;  %v89_v17 = vld [vmem:[#allocation5 + $0x40] sm:$0xff]  ;;  %v90_v18 = vld [vmem:[#allocation5 + $0x48] sm:$0xff]  ;;  %v91_v20 = vld [vmem:[#allocation5 + $0x50] sm:$0xff]  ;;  %p740_p4 = scmp.ne.s32.totalorder %s396_s28, %s739_s29  ;;  %p745_p6 = scmp.lt.s32.totalorder %s739_s29, %s739_s29 }
  0x4e   :  { %568 = vmatprep.subr.bf16.mxu0 %v775_v0  ;;  %v578_v19 = vpack.c.bf16 %v90_v18, %v89_v17  ;;  %v92_v21 = vld [vmem:[#allocation5 + $0x58] sm:$0xff]  ;;  %v93_v23 = vld [vmem:[#allocation5 + $0x60] sm:$0xff]  ;;  %v94_v24 = vld [vmem:[#allocation5 + $0x68] sm:$0xff] }
  0x4f   :  { %591 = vmatpush3.bf16.msra.mxu1 %v590_v13  ;;  %v581_v22 = vpack.c.bf16 %v92_v21, %v91_v20  ;;  %v584_v25 = vpack.c.bf16 %v94_v24, %v93_v23  ;;  %v95_v26 = vld [vmem:[#allocation5 + $0x70] sm:$0xff]  ;;  %v96_v27 = vld [vmem:[#allocation5 + $0x78] sm:$0xff]  ;;  %v192_v33 = vld [vmem:[#allocation7 + $0x20] sm:$0xff]  ;;  %p746_p7 = por %p745_p6, %p744_p5 }
  0x50   :  { %592 = vmatprep.subr.bf16.mxu1 %v775_v0  ;;  %v587_v28 = vpack.c.bf16 %v96_v27, %v95_v26  ;;  %v80_v29 = vld [vmem:[#allocation2] sm:$0xff]  ;;  %v190_v30 = vld [vmem:[#allocation7 + $0x10] sm:$0xff]  ;;  %v193_v34 = vld [vmem:[#allocation7 + $0x28] sm:$0xff] }
  0x51   :  { %570 = vmatpush3.bf16.msra.mxu0 %v569_v7  ;;  %v191_v31 = vld [vmem:[#allocation7 + $0x18] sm:$0xff]  ;;  %v596_v35 = vpack.c.bf16 %v193_v34, %v192_v33  ;;  %v194_v36 = vld [vmem:[#allocation7 + $0x30] sm:$0xff]  ;;  %v196_v39 = vld [vmem:[#allocation7 + $0x40] sm:$0xff]  ;;  %p747_p8 = pnand %p746_p7, %p740_p4 }
  0x52   :  { %571 = vmatprep.subr.bf16.mxu0 %v775_v0  ;;  %v593_v32 = vpack.c.bf16 %v191_v31, %v190_v30  ;;  %v195_v37 = vld [vmem:[#allocation7 + $0x38] sm:$0xff]  ;;  %v197_v40 = vld [vmem:[#allocation7 + $0x48] sm:$0xff]  ;;  %v198_v42 = vld [vmem:[#allocation7 + $0x50] sm:$0xff] }
  0x53   :  { %v599_v38 = vpack.c.bf16 %v195_v37, %v194_v36  ;;  %v602_v41 = vpack.c.bf16 %v197_v40, %v196_v39  ;;  %v199_v43 = vld [vmem:[#allocation7 + $0x58] sm:$0xff]  ;;  %v200_v45 = vld [vmem:[#allocation7 + $0x60] sm:$0xff]  ;;  %v201_v46 = vld [vmem:[#allocation7 + $0x68] sm:$0xff] }
  0x54   :  { %594 = vmatpush3.bf16.msra.mxu1 %v593_v32  ;;  %v605_v44 = vpack.c.bf16 %v199_v43, %v198_v42  ;;  %v608_v47 = vpack.c.bf16 %v201_v46, %v200_v45  ;;  %v202_v48 = vld [vmem:[#allocation7 + $0x70] sm:$0xff]  ;;  %v203_v49 = vld [vmem:[#allocation7 + $0x78] sm:$0xff]  ;;  %v295_v51 = vld [vmem:[#allocation8] sm:$0xff] }
  0x55   :  { %573 = vmatpush3.bf16.msra.mxu0 %v572_v12  ;;  %595 = vmatprep.subr.bf16.mxu1 %v775_v0  ;;  %v611_v50 = vpack.c.bf16 %v203_v49, %v202_v48  ;;  %v296_v52 = vld [vmem:[#allocation8 + $0x8] sm:$0xff]  ;;  %v406_v54 = vld [vmem:[%s928_s4] ss:$0 sm:$0xff]  ;;  %v297_v9 = vld [vmem:[#allocation8 + $0x10] sm:$0xff] }
  0x56   :  { %574 = vmatprep.subr.bf16.mxu0 %v775_v0  ;;  %v614_v53 = vpack.c.bf16 %v296_v52, %v295_v51  ;;  %v298_v10 = vld [vmem:[#allocation8 + $0x18] sm:$0xff]  ;;  %v299_v12 = vld [vmem:[#allocation8 + $0x20] sm:$0xff]  ;;  %v300_v13 = vld [vmem:[#allocation8 + $0x28] sm:$0xff] }
  0x57   :  { %v617_v11 = vpack.c.bf16 %v298_v10, %v297_v9  ;;  %v620_v14 = vpack.c.bf16 %v300_v13, %v299_v12  ;;  %v301_v15 = vld [vmem:[#allocation8 + $0x30] sm:$0xff]  ;;  %v303_v18 = vld [vmem:[#allocation8 + $0x40] sm:$0xff]  ;;  %v407_v30 = vld [vmem:[%s929_s5] ss:$0 sm:$0xff] }
  0x58   :  { %597 = vmatpush3.bf16.msra.mxu1 %v596_v35  ;;  %v305_v21 = vld [vmem:[#allocation8 + $0x50] sm:$0xff]  ;;  %v307_v24 = vld [vmem:[#allocation8 + $0x60] sm:$0xff] }
  0x59   :  { %576 = vmatpush3.bf16.msra.mxu0 %v575_v16  ;;  %598 = vmatprep.subr.bf16.mxu1 %v775_v0  ;;  %v302_v16 = vld [vmem:[#allocation8 + $0x38] sm:$0xff]  ;;  %v309_v27 = vld [vmem:[#allocation8 + $0x70] sm:$0xff] }
  0x5a   :  { %577 = vmatprep.subr.bf16.mxu0 %v775_v0  ;;  %v623_v17 = vpack.c.bf16 %v302_v16, %v301_v15 }
  0x5c   :  { %600 = vmatpush3.bf16.msra.mxu1 %v599_v38 }
  0x5d   :  { %579 = vmatpush3.bf16.msra.mxu0 %v578_v19  ;;  %601 = vmatprep.subr.bf16.mxu1 %v775_v0  ;;  %v304_v19 = vld [vmem:[#allocation8 + $0x48] sm:$0xff] }
  0x5e   :  { %580 = vmatprep.subr.bf16.mxu0 %v775_v0  ;;  %v626_v20 = vpack.c.bf16 %v304_v19, %v303_v18 }
  0x60   :  { %603 = vmatpush3.bf16.msra.mxu1 %v602_v41 }
  0x61   :  { %582 = vmatpush3.bf16.msra.mxu0 %v581_v22  ;;  %604 = vmatprep.subr.bf16.mxu1 %v775_v0  ;;  %v306_v22 = vld [vmem:[#allocation8 + $0x58] sm:$0xff] }
  0x62   :  { %583 = vmatprep.subr.bf16.mxu0 %v775_v0  ;;  %v629_v23 = vpack.c.bf16 %v306_v22, %v305_v21 }
  0x64   :  { %606 = vmatpush3.bf16.msra.mxu1 %v605_v44 }
  0x65   :  { %585 = vmatpush3.bf16.msra.mxu0 %v584_v25  ;;  %607 = vmatprep.subr.bf16.mxu1 %v775_v0  ;;  %v308_v25 = vld [vmem:[#allocation8 + $0x68] sm:$0xff] }
  0x66   :  { %586 = vmatprep.subr.bf16.mxu0 %v775_v0  ;;  %v632_v26 = vpack.c.bf16 %v308_v25, %v307_v24 }
  0x68   :  { %609 = vmatpush3.bf16.msra.mxu1 %v608_v47  ;;  %v408_v47 = vld [vmem:[%s930_s6] ss:$0 sm:$0xff] }
  0x69   :  { %588 = vmatpush3.bf16.msra.mxu0 %v587_v28  ;;  %610 = vmatprep.subr.bf16.mxu1 %v775_v0  ;;  %v310_v28 = vld [vmem:[#allocation8 + $0x78] sm:$0xff] }
  0x6a   :  { %613 = vmatprep.subr.bf16.mxu0 %v775_v0 }
  0x6c   :  { %493 = vmatmul.mubr.f32.vlgmr.msra.gmra.mrb[0].mxu0 %v80_v29  ;;  %612 = vmatpush3.bf16.msra.mxu1 %v611_v50  ;;  %v635_v29 = vpack.c.bf16 %v310_v28, %v309_v27 }
  0x6d   :  { %562 = vmatprep.mubr.msk.f32.mxu0 %vm776_vm0, %v777_v1  ;;  %615 = vmatpush3.bf16.msra.mxu0 %v614_v53 }
  0x6e   :  { %616 = vmatprep.subr.bf16.mxu0 %v775_v0 }
  0x71   :  { %618 = vmatpush3.bf16.msra.mxu0 %v617_v11 }
  0x72   :  { %619 = vmatprep.subr.bf16.mxu0 %v775_v0 }
  0x75   :  { %621 = vmatpush3.bf16.msra.mxu0 %v620_v14 }
  0x76   :  { %622 = vmatprep.subr.bf16.mxu0 %v775_v0 }
  0x79   :  { %624 = vmatpush3.bf16.msra.mxu0 %v623_v17 }
  0x7a   :  { %625 = vmatprep.subr.bf16.mxu0 %v775_v0 }
  0x7d   :  { %627 = vmatpush3.bf16.msra.mxu0 %v626_v20 }
  0x7e   :  { %628 = vmatprep.subr.bf16.mxu0 %v775_v0 }
  0x81   :  { %630 = vmatpush3.bf16.msra.mxu0 %v629_v23 }
  0x82   :  { %631 = vmatprep.subr.bf16.mxu0 %v775_v0 }
  0x85   :  { %633 = vmatpush3.bf16.msra.mxu0 %v632_v26 }
  0x86   :  { %634 = vmatprep.subr.bf16.mxu0 %v775_v0 }
  0x89   :  { %636 = vmatpush3.bf16.msra.mxu0 %v635_v29 }
 0x13f   :  { %v170_v55 = vpop.f32.mrb[0].mxu0 }
 0x140   :  { %v171_v56 = vadd.f32 %v406_v54, %v170_v55  ;;  %v494_v57 = vpop.f32.mrb[1].mxu0 }
 0x142   :  { %v180_v58 = vmul.f32 2.383, %v171_v56  ;;  %v174_v59 = vmul.f32 1.1915, %v171_v56 }
 0x144   :  { %v181_v60 = vmul.f32 %v180_v58, %v171_v56  ;;  %v175_v62 = vadd.f32 1.5957, %v174_v59 }
 0x146   :  { %v182_v61 = vadd.f32 1.0, %v181_v60  ;;  %v176_v63 = vmul.f32 %v175_v62, %v171_v56 }
 0x148   :  { %647 = vrcp.f32 %v182_v61  ;;  %v177_v1 = vadd.f32 0.5, %v176_v63 }
 0x14a   :  { %v178_v3 = vmul.f32 %v177_v1, %v171_v56 }
 0x14c   :  { %v179_v6 = vadd.f32 0.0218, %v178_v3 }
 0x152   :  { %v648_v2 = vpop.eup %647 }
 0x153   :  { %v184_v4 = vmul.f32 %v648_v2, %v182_v61 }
 0x155   :  { %v185_v5 = vsub.f32 2.0, %v184_v4 }
 0x157   :  { %v186_v7 = vmul.f32 %v648_v2, %v185_v5 }
 0x159   :  { %v187_v8 = vmul.f32 %v186_v7, %v179_v6 }
 0x15b   :  { %528 = vmatmul.mubr.f32.vlgmr.msra.gmra.mrb[0].mxu1 %v187_v8 }
 0x22e   :  { %v277_v31 = vpop.f32.mrb[0].mxu1 }
 0x22f   :  { %v278_v32 = vadd.f32 %v407_v30, %v277_v31  ;;  %v529_v33 = vpop.f32.mrb[1].mxu1 }
 0x231   :  { %v287_v34 = vmul.f32 2.383, %v278_v32  ;;  %v281_v35 = vmul.f32 1.1915, %v278_v32 }
 0x233   :  { %v288_v36 = vmul.f32 %v287_v34, %v278_v32  ;;  %v282_v38 = vadd.f32 1.5957, %v281_v35 }
 0x235   :  { %v289_v37 = vadd.f32 1.0, %v288_v36  ;;  %v283_v39 = vmul.f32 %v282_v38, %v278_v32 }
 0x237   :  { %649 = vrcp.f32 %v289_v37  ;;  %v284_v40 = vadd.f32 0.5, %v283_v39 }
 0x239   :  { %v285_v42 = vmul.f32 %v284_v40, %v278_v32 }
 0x23b   :  { %v286_v44 = vadd.f32 0.0218, %v285_v42 }
 0x241   :  { %v650_v41 = vpop.eup %649 }
 0x242   :  { %v291_v43 = vmul.f32 %v650_v41, %v289_v37 }
 0x244   :  { %v292_v0 = vsub.f32 2.0, %v291_v43 }
 0x246   :  { %v293_v45 = vmul.f32 %v650_v41, %v292_v0 }
 0x248   :  { %v294_v46 = vmul.f32 %v293_v45, %v286_v44 }
 0x24a   :  { %563 = vmatmul.mubr.f32.vlgmr.msra.gmra.mrb[2].mxu0 %v294_v46 }
 0x31d   :  { %v384_v48 = vpop.f32.mrb[2].mxu0 }
 0x31e   :  { %v385_v49 = vadd.f32 %v408_v47, %v384_v48  ;;  %v564_v50 = vpop.f32.mrb[3].mxu0 }
 0x320   :  { %388 = vst [vmem:[#allocation10] sm:$0xff] %v385_v49 }
 0x321   :  { %750 = shalt.err (!%p747_p8)
}
 0x322   :  { %s751_s9 = scalar_lea.hbm %s931_s7, 128 }
 0x323   :  { %p752_p9 = scmp.ne.s32.totalorder %s931_s7, %s751_s9  ;;  %p755_p10 = scmp.lt.u32.totalorder %s751_s9, %s931_s7 }
 0x325   :  { %p757_p11 = pnand %p755_p10, %p752_p9 }
 0x327   :  { %760 = shalt.err (!%p757_p11)
}
 0x328   :  { %398 = dma.vmem_to_hbm [thread:$0]  %s396_s28, 128, %s931_s7, [#allocation4]  }
 0x329   :  { %767 = dma.done.wait [#allocation4], 128  }
 0x32a   :  { %768 = vsyncadd [#allocation4], 4294967168 }
 0x32b   :  { %402 = vsyncpa [#allocation3], 1 }
 0x32c   :  { %403 = vsyncpa [#allocation6], 1 }
 0x32d   :  { %404 = vsyncpa [#allocation9], 1 }
 0x32e   :  { %405 = vsyncpa [#allocation4], 1 }

</bundles_post_ra>
